<compile_context>
chip_gen: v7x
topology: tpu7x:2x2x1
jax: 0.10.0
libtpu: 0.0.40
codegen_flags: <defaults>
</compile_context>

<pallas_src>
import jax
import jax.numpy as jnp
from jax.experimental import pallas as pl
from jax.experimental.pallas import tpu as pltpu  # noqa: F401  (TPU backend)

B, S, H = 2, 8, 32          # small shapes consistent with the module
MID_TOKEN = S // 2          # self.mid_token
NUM_CLASSES = 2             # torch.nn.Linear(hidden_size, 2)


def custom_model_kernel(x_ref, wm_ref, bm_ref, wc_ref, bc_ref, out_ref):
    # x_ref:  [B, S, H]   wm_ref: [H, H]   bm_ref: [1, H]
    # wc_ref: [H, 2]      bc_ref: [1, 2]   out_ref: [B, 2]

    # Mid-token select done in-kernel (static index -> plain VMEM load, no XLA op).
    x_mid = x_ref[:, MID_TOKEN, :]                               # [B, H]

    # Synthetic inner "model" restricted to the mid token: tanh(x_mid @ Wm + bm).
    hidden = jnp.dot(x_mid, wm_ref[...],
                     preferred_element_type=jnp.float32)
    hidden = jnp.tanh(hidden + bm_ref[...])                      # [B, H], f32 bias+tanh

    # Classifier: [B, H] @ [H, 2] + [1, 2]  ->  [B, 2]
    pred = jnp.dot(hidden, wc_ref[...],
                   preferred_element_type=jnp.float32) + bc_ref[...]
    out_ref[...] = pred.astype(out_ref.dtype)


def custom_model_forward(x, wm, bm, wc, bc):
    b, s, h = x.shape
    return pl.pallas_call(
        custom_model_kernel,
        out_shape=jax.ShapeDtypeStruct((b, NUM_CLASSES), jnp.float32),
        in_specs=[
            pl.BlockSpec((b, s, h), lambda: (0, 0, 0)),          # x   [B, S, H]
            pl.BlockSpec((h, h), lambda: (0, 0)),                # Wm  [H, H]
            pl.BlockSpec((1, h), lambda: (0, 0)),                # bm  [1, H]
            pl.BlockSpec((h, NUM_CLASSES), lambda: (0, 0)),      # Wc  [H, 2]
            pl.BlockSpec((1, NUM_CLASSES), lambda: (0, 0)),      # bc  [1, 2]
        ],
        out_specs=pl.BlockSpec((b, NUM_CLASSES), lambda: (0, 0)),
    )(x, wm, bm, wc, bc)


def reference_forward(x, wm, bm, wc, bc):
    seq = jnp.tanh(jnp.einsum("bsh,hk->bsk", x, wm) + bm[None, :, :])
    mid = seq[:, MID_TOKEN, :]
    return jnp.dot(mid, wc) + bc


if __name__ == "__main__":
    key = jax.random.PRNGKey(0)
    kx, kwm, kbm, kwc, kbc = jax.random.split(key, 5)

    x = jax.random.normal(kx, (B, S, H), dtype=jnp.float32)

    # deterministic synthetic parameters (shapes from the module constructor)
    # TODO(synk): the inner `self.model` is an opaque module in the spec; it is
    # modeled here as a per-token linear + tanh returning the sequence as [0].
    wm = jax.random.normal(kwm, (H, H), dtype=jnp.float32) * (1.0 / jnp.sqrt(H))
    bm = jax.random.normal(kbm, (1, H), dtype=jnp.float32) * 0.01
    wc = jax.random.normal(kwc, (H, NUM_CLASSES), dtype=jnp.float32) * (1.0 / jnp.sqrt(H))
    bc = jax.random.normal(kbc, (1, NUM_CLASSES), dtype=jnp.float32) * 0.01

    out = custom_model_forward(x, wm, bm, wc, bc)
    out = jax.block_until_ready(out)

    ref = reference_forward(x, wm, bm, wc, bc)
    assert out.shape == (B, NUM_CLASSES), out.shape
    assert jnp.allclose(out, ref, atol=1e-5, rtol=1e-5), "mismatch vs reference"

    print("KERNEL_OK")
</pallas_src>

<mosaic_0001>
module attributes {stable_mosaic.version = 11 : i64} {
  func.func @custom_model_kernel(%arg0: memref<2x8x32xf32, #tpu.memory_space<vmem>>, %arg1: memref<32x32xf32, #tpu.memory_space<vmem>>, %arg2: memref<1x32xf32, #tpu.memory_space<vmem>>, %arg3: memref<32x2xf32, #tpu.memory_space<vmem>>, %arg4: memref<1x2xf32, #tpu.memory_space<vmem>>, %arg5: memref<2x2xf32, #tpu.memory_space<vmem>>) attributes {dimension_semantics = [], scalar_prefetch = 0 : i64, scratch_operands = 0 : i64, tpu.core_type = #tpu.core_type<tc>} {
    %c0 = arith.constant 0 : index
    %c4 = arith.constant 4 : index
    %c0_0 = arith.constant 0 : index
    %0 = vector.load %arg0[%c0, %c4, %c0_0] : memref<2x8x32xf32, #tpu.memory_space<vmem>>, vector<2x1x32xf32>
    %1 = vector.shape_cast %0 : vector<2x1x32xf32> to vector<2x32xf32>
    %c0_1 = arith.constant 0 : index
    %c0_2 = arith.constant 0 : index
    %2 = vector.load %arg1[%c0_1, %c0_2] : memref<32x32xf32, #tpu.memory_space<vmem>>, vector<32x32xf32>
    %cst = arith.constant dense<0.000000e+00> : vector<2x32xf32>
    %3 = tpu.matmul %1, %2, %cst {dimension_numbers = #tpu.dot_dimension_numbers<[1], [0], [0], [1], [0, 0, 1, 1], [], []>} : vector<2x32xf32>, vector<32x32xf32>, vector<2x32xf32> -> vector<2x32xf32>
    %c0_3 = arith.constant 0 : index
    %c0_4 = arith.constant 0 : index
    %4 = vector.load %arg2[%c0_3, %c0_4] : memref<1x32xf32, #tpu.memory_space<vmem>>, vector<1x32xf32>
    %5 = vector.broadcast %4 : vector<1x32xf32> to vector<2x32xf32>
    %6 = arith.addf %3, %5 : vector<2x32xf32>
    %7 = math.tanh %6 : vector<2x32xf32>
    %c0_5 = arith.constant 0 : index
    %c0_6 = arith.constant 0 : index
    %8 = vector.load %arg3[%c0_5, %c0_6] : memref<32x2xf32, #tpu.memory_space<vmem>>, vector<32x2xf32>
    %cst_7 = arith.constant dense<0.000000e+00> : vector<2x2xf32>
    %9 = tpu.matmul %7, %8, %cst_7 {dimension_numbers = #tpu.dot_dimension_numbers<[1], [0], [0], [1], [0, 0, 1, 1], [], []>} : vector<2x32xf32>, vector<32x2xf32>, vector<2x2xf32> -> vector<2x2xf32>
    %c0_8 = arith.constant 0 : index
    %c0_9 = arith.constant 0 : index
    %10 = vector.load %arg4[%c0_8, %c0_9] : memref<1x2xf32, #tpu.memory_space<vmem>>, vector<1x2xf32>
    %11 = vector.broadcast %10 : vector<1x2xf32> to vector<2x2xf32>
    %12 = arith.addf %9, %11 : vector<2x2xf32>
    %c0_10 = arith.constant 0 : index
    %c0_11 = arith.constant 0 : index
    %13 = vector.load %arg5[%c0_10, %c0_11] : memref<2x2xf32, #tpu.memory_space<vmem>>, vector<2x2xf32>
    tpu.vector_store %arg5[%c0_10, %c0_11], %12 {strides = array<i32>} : memref<2x2xf32, #tpu.memory_space<vmem>>, vector<2x2xf32>,
    return
  }
}

</mosaic_0001>

<bundles_post_ra>
// kernel: tpu_custom_call.1
= control target key start
LH: loop header
LB: loop body
LE: loop exit
PB: predicated region body
PF: predicated region fallthrough
CT: control target
= control target key end

     0   :  { %10 = vsyncpa [#allocation3], 0  ;;  %s426_s0 = inlined_call_operand.hbm [shape: f32[2,8,32], index: 0, kind: input, shape index: {}]   ;;  %s427_s1 = inlined_call_operand.vmem [shape: f32[32,32], index: 1, kind: input, shape index: {}]   ;;  %s428_s2 = inlined_call_operand.vmem [shape: f32[1,32], index: 2, kind: input, shape index: {}]   ;;  %s429_s3 = inlined_call_operand.vmem [shape: f32[32,2], index: 3, kind: input, shape index: {}]   ;;  %s430_s4 = inlined_call_operand.vmem [shape: f32[1,2], index: 4, kind: input, shape index: {}]   ;;  %s431_s5 = inlined_call_operand.hbm [shape: f32[2,2], index: 5, kind: output, shape index: {}]  }
   0x1   :  { %11 = vsyncpa [#allocation4], 0  ;;  %s333_s18 = smov [#allocation2]   ;;  %s285_s22 = scalar_lea.hbm %s426_s0, 256 }
   0x2   :  { %s17_s19 = sshll.u32 %s333_s18, 4  ;;  %p286_p0 = scmp.ne.s32.totalorder %s426_s0, %s285_s22  ;;  %s18_s19 = int_to_ptr.vmem [resolvable:$true] %s17_s19 }
   0x3   :  { %p289_p1 = scmp.lt.u32.totalorder %s285_s22, %s426_s0 }
   0x5   :  { %p291_p2 = pnand %p289_p1, %p286_p0 }
   0x7   :  { %294 = shalt.err (!%p291_p2)
}
   0x8   :  { %s295_s27 = scalar_lea.vmem %s18_s19, 256  ;;  %p300_p4 = scmp.lt.s32.totalorder %s18_s19, %s18_s19 }
   0x9   :  { %p296_p3 = scmp.ne.s32.totalorder %s18_s19, %s295_s27  ;;  %p301_p5 = scmp.lt.s32.totalorder %s295_s27, %s295_s27 }
   0xb   :  { %p302_p6 = por %p301_p5, %p300_p4 }
   0xd   :  { %p303_p7 = pnand %p302_p6, %p296_p3 }
   0xf   :  { %306 = shalt.err (!%p303_p7)
}
  0x10   :  { %s334_s28 = smov 128   ;;  %s335_s29 = smov 8  }
  0x11   :  { %23 = dma.hbm_to_vmem [thread:$0]  %s426_s0, 256, %s18_s19, [#allocation3], %s334_s28, %s334_s28, %s335_s29  }
  0x12   :  { %329 = dma.done.wait [#allocation3], 256  }
  0x13   :  { %330 = vsyncadd [#allocation3], 4294967040  ;;  %v336_v0 = vmov 0.0|0.0   ;;  %vm337_vm0 = vmmov 0   ;;  %v338_v1 = vmov 0.0   ;;  %v37_v2 = vld [vmem:[%s427_s1] sm:$0xff] }
  0x14   :  { %264 = vmatprep.subr.bf16.mxu0 %v336_v0  ;;  %250 = vmatprep.mubr.msk.f32.mxu0 %vm337_vm0, %v338_v1  ;;  %v38_v3 = vld [vmem:[%s427_s1 + $0x8] sm:$0xff]  ;;  %v39_v4 = vld [vmem:[%s427_s1 + $0x10] sm:$0xff]  ;;  %v40_v6 = vld [vmem:[%s427_s1 + $0x18] sm:$0xff]  ;;  %vm51_vm1 = vcmask 1041409   ;;  %vm53_vm2 = vcmask 261120   ;;  %vm211_vm3 = vcmask 9216  }
  0x15   :  { %270 = vmatprep.subr.bf16.mxu1 %v336_v0  ;;  %261 = vmatprep.mubr.msk.f32.mxu1 %vm337_vm0, %v338_v1  ;;  %v265_v5 = vpack.c.bf16 %v38_v3, %v37_v2  ;;  %v36_v7 = vld [vmem:[#allocation2 + $0xc] sm:$0x1]  ;;  %v268_v8 = vpack.c.bf16 %v40_v6, %v39_v4  ;;  %v35_v10 = vld [vmem:[#allocation2 + $0x4] sm:$0x1]  ;;  %v129_v14 = vld [vmem:[%s429_s3 + $0x10] sm:$0xff] }
  0x16   :  { %v50_v9 = vrot.slane %v36_v7, 7  ;;  %v127_v12 = vld [vmem:[%s429_s3] sm:$0xff]  ;;  %v128_v13 = vld [vmem:[%s429_s3 + $0x8] sm:$0xff]  ;;  %v130_v16 = vld [vmem:[%s429_s3 + $0x18] sm:$0xff]  ;;  %s339_s3 = smov [#allocation5]  }
  0x17   :  { %266 = vmatpush3.bf16.msra.mxu0 %v265_v5  ;;  %v271_v15 = vpack.c.bf16 %v128_v13, %v127_v12  ;;  %v274_v17 = vpack.c.bf16 %v130_v16, %v129_v14  ;;  %v228_v18 = vld [vmem:[%s428_s2] ss:$0 sm:$0xff]  ;;  %s219_s25 = sshll.u32 %s339_s3, 4  ;;  %s220_s25 = int_to_ptr.vmem [resolvable:$true] %s219_s25 }
  0x18   :  { %267 = vmatprep.subr.bf16.mxu0 %v336_v0  ;;  %v52_v11 = vsel %vm51_vm1, %v50_v9, %v35_v10  ;;  %v230_v23 = vld [vmem:[%s430_s4] ss:$0 sm:$0xff]  ;;  %s307_s2 = scalar_lea.vmem %s220_s25, 32  ;;  %p312_p9 = scmp.lt.s32.totalorder %s220_s25, %s220_s25 }
  0x19   :  { %272 = vmatpush3.bf16.msra.mxu1 %v271_v15  ;;  %p308_p8 = scmp.ne.s32.totalorder %s220_s25, %s307_s2  ;;  %p313_p10 = scmp.lt.s32.totalorder %s307_s2, %s307_s2 }
  0x1a   :  { %273 = vmatprep.subr.bf16.mxu1 %v336_v0 }
  0x1b   :  { %269 = vmatpush3.bf16.msra.mxu0 %v268_v8  ;;  %p314_p11 = por %p313_p10, %p312_p9 }
  0x1d   :  { %275 = vmatpush3.bf16.msra.mxu1 %v274_v17  ;;  %p315_p12 = pnand %p314_p11, %p308_p8 }
  0x1e   :  { %251 = vmatmul.mubr.msk.f32.vlgmr.msra.gmra.mrb[0].mxu0 %vm53_vm2, %v52_v11 }
  0xf1   :  { %v122_v19 = vpop.f32.mrb[0].mxu0 }
  0xf2   :  { %v123_v20 = vadd.f32 %v228_v18, %v122_v19  ;;  %v252_v21 = vpop.f32.mrb[1].mxu0 }
  0xf4   :  { %283 = vtanh.f32 %v123_v20 }
  0xfe   :  { %v284_v22 = vpop.eup %283 }
  0xff   :  { %262 = vmatmul.mubr.msk.f32.vlgmr.msra.gmra.mrb[0].mxu1 %vm53_vm2, %v284_v22 }
 0x1d2   :  { %v207_v24 = vpop.f32.mrb[0].mxu1 }
 0x1d3   :  { %v208_v25 = vadd.f32 %v230_v23, %v207_v24  ;;  %v263_v26 = vpop.f32.mrb[1].mxu1 }
 0x1d5   :  { %212 = vst.msk [vmem:[#allocation5] sm:$0x3] %vm211_vm3, %v208_v25 }
 0x1d6   :  { %318 = shalt.err (!%p315_p12)
}
 0x1d7   :  { %s319_s28 = scalar_lea.hbm %s431_s5, 32 }
 0x1d8   :  { %p320_p13 = scmp.ne.s32.totalorder %s431_s5, %s319_s28  ;;  %p323_p0 = scmp.lt.u32.totalorder %s319_s28, %s431_s5 }
 0x1da   :  { %p325_p1 = pnand %p323_p0, %p320_p13 }
 0x1dc   :  { %328 = shalt.err (!%p325_p1)
}
 0x1dd   :  { %222 = dma.vmem_to_hbm [thread:$0]  %s220_s25, 32, %s431_s5, [#allocation4]  }
 0x1de   :  { %331 = dma.done.wait [#allocation4], 32  }
 0x1df   :  { %332 = vsyncadd [#allocation4], 4294967264 }
 0x1e0   :  { %226 = vsyncpa [#allocation3], 1 }
 0x1e1   :  { %227 = vsyncpa [#allocation4], 1 }

</bundles_post_ra>
